<compile_context>
chip_gen: v5e
topology: v5e:2x2
jax: 0.10.0
libtpu: 0.0.40
codegen_flags: <defaults>
</compile_context>

<pallas_src>
import jax
import jax.numpy as jnp
from jax.experimental import pallas as pl
from jax.experimental.pallas import tpu as pltpu


_LANE = 128      # padded action dimension (lane width)
_TB_MAX = 512    # max batch (row) tile; multiple of 8
_OUT_W = 8       # output slab width (== full array last dim -> legal block shape)

# evaluate() slab columns
_COL_LOGP_ACT = 0   # log_prob(action)
_COL_ENTROPY = 1    # dist.entropy()
_COL_VALUE = 2      # critic(neural_state)
# act() slab columns
_COL_ARGMAX = 0     # first argmax action (as float)
_COL_LOGP_MAX = 1   # log_prob(argmax action)


# ----------------------------------------------------------------------------
# Kernels
# ----------------------------------------------------------------------------
def _actor_softmax_stats(x, wa, ba):
    """logits = x @ Wa + ba (pad lanes biased -1e30, finite!); softmax pieces in f32."""
    logits = jnp.dot(x, wa, preferred_element_type=jnp.float32) + ba
    m = jnp.max(logits, axis=-1, keepdims=True)
    shifted = logits - m
    e = jnp.exp(shifted)                             # pad lanes -> exactly 0
    s = jnp.sum(e, axis=-1, keepdims=True)           # >= 1, safe for approx recip
    inv_s = pl.reciprocal(s, approx=True)            # EUP slot, VALU stays free
    log_s = jnp.log(s)
    return logits, m, shifted, e, inv_s, log_s


def _evaluate_kernel(x_ref, act_ref, n_ref, wa_ref, ba_ref,
                     w1_ref, b1_ref, w2_ref, b2_ref, out_ref):
    logits, _, shifted, e, inv_s, log_s = _actor_softmax_stats(
        x_ref[...], wa_ref[...], ba_ref[...])
    lane = jax.lax.broadcasted_iota(jnp.int32, logits.shape, 1)   # single iota, reused

    # Categorical.log_prob(action): lane-mask gather + cross-lane sum.
    a_idx = act_ref[...]                              # (TB, 1) int32
    logp = shifted - log_s
    logp_action = jnp.sum(jnp.where(lane == a_idx, logp, 0.0),
                          axis=-1, keepdims=True)

    # Categorical.entropy() without materializing probs (pad lanes: e == 0 -> no NaN).
    entropy = log_s - inv_s * jnp.sum(e * shifted, axis=-1, keepdims=True)

    # critic: tanh MLP; 2nd layer as VPU mul + lane reduce (avoids an N=1 MXU dot).
    h = jnp.tanh(jnp.dot(n_ref[...], w1_ref[...],
                         preferred_element_type=jnp.float32) + b1_ref[...])
    value = jnp.sum(h * w2_ref[...], axis=-1, keepdims=True) + b2_ref[...]

    # pack into a narrow (TB, 8) slab -> 16x less HBM write traffic than (TB, 128).
    col = jax.lax.broadcasted_iota(jnp.int32, out_ref.shape, 1)
    slab = jnp.where(col == _COL_LOGP_ACT, logp_action, 0.0)
    slab = jnp.where(col == _COL_ENTROPY, entropy, slab)
    slab = jnp.where(col == _COL_VALUE, value, slab)
    out_ref[...] = slab


def _act_kernel(x_ref, wa_ref, ba_ref, out_ref):
    # Specialized act() path: no critic, no action gather, no dummy inputs.
    logits, m, _, _, _, log_s = _actor_softmax_stats(
        x_ref[...], wa_ref[...], ba_ref[...])
    lane = jax.lax.broadcasted_iota(jnp.int32, logits.shape, 1)
    a_pad = logits.shape[-1]

    # first index where prob == max(prob); its log-prob is exactly -log(s).
    argmax_idx = jnp.min(jnp.where(logits == m, lane, a_pad),
                         axis=-1, keepdims=True)
    logp_argmax = -log_s

    col = jax.lax.broadcasted_iota(jnp.int32, out_ref.shape, 1)
    slab = jnp.where(col == _COL_ARGMAX, argmax_idx.astype(jnp.float32), 0.0)
    slab = jnp.where(col == _COL_LOGP_MAX, logp_argmax, slab)
    out_ref[...] = slab


# ----------------------------------------------------------------------------
# pallas_call wrappers
# ----------------------------------------------------------------------------
def _round_up(n, m):
    return ((n + m - 1) // m) * m


def _tile_rows(batch):
    # adaptive tile: big batches get big tiles (few grid steps), B=1 stays at 8 rows.
    return min(_TB_MAX, _round_up(batch, 8))


def _pad_rows(x, rows):
    pad = rows - x.shape[0]
    if pad:
        x = jnp.pad(x, ((0, pad),) + ((0, 0),) * (x.ndim - 1))
    return x


def _const_spec(shape):
    # weights: constant block index -> stay VMEM-resident across all grid steps.
    return pl.BlockSpec(shape, lambda i: (0,) * len(shape))


def _evaluate_forward(params, logic_flat, actions, neural):
    B, F = logic_flat.shape
    Dn = neural.shape[1]
    H = params["w1"].shape[1]
    A_pad = params["wa"].shape[1]

    tb = _tile_rows(B)
    b_pad = _round_up(B, tb)
    x = _pad_rows(logic_flat.astype(jnp.bfloat16), b_pad)
    n = _pad_rows(neural.astype(jnp.bfloat16), b_pad)
    a = _pad_rows(actions.astype(jnp.int32).reshape(B, 1), b_pad)

    slab = pl.pallas_call(
        _evaluate_kernel,
        out_shape=jax.ShapeDtypeStruct((b_pad, _OUT_W), jnp.float32),
        grid_spec=pltpu.PrefetchScalarGridSpec(
            num_scalar_prefetch=0,
            grid=(b_pad // tb,),
            in_specs=[
                pl.BlockSpec((tb, F), lambda i: (i, 0)),   # logic state (flattened, bf16)
                pl.BlockSpec((tb, 1), lambda i: (i, 0)),   # action indices
                pl.BlockSpec((tb, Dn), lambda i: (i, 0)),  # neural state (bf16)
                _const_spec((F, A_pad)),                   # actor W (bf16, resident)
                _const_spec((1, A_pad)),                   # actor bias (f32, pad=-1e30)
                _const_spec((Dn, H)),                      # critic W1 (bf16)
                _const_spec((1, H)),                       # critic b1
                _const_spec((1, H)),                       # critic w2 (row, f32)
                _const_spec((1, 1)),                       # critic b2
            ],
            out_specs=pl.BlockSpec((tb, _OUT_W), lambda i: (i, 0)),
        ),
        compiler_params=pltpu.CompilerParams(
            dimension_semantics=("parallel",)),
    )(x, a, n, params["wa"], params["ba"],
      params["w1"], params["b1"], params["w2"], params["b2"])
    return slab[:B]


def _act_forward(params, logic_flat):
    B, F = logic_flat.shape
    A_pad = params["wa"].shape[1]

    tb = _tile_rows(B)
    b_pad = _round_up(B, tb)
    x = _pad_rows(logic_flat.astype(jnp.bfloat16), b_pad)

    slab = pl.pallas_call(
        _act_kernel,
        out_shape=jax.ShapeDtypeStruct((b_pad, _OUT_W), jnp.float32),
        grid_spec=pltpu.PrefetchScalarGridSpec(
            num_scalar_prefetch=0,
            grid=(b_pad // tb,),
            in_specs=[
                pl.BlockSpec((tb, F), lambda i: (i, 0)),   # logic state (bf16)
                _const_spec((F, A_pad)),                   # actor W (bf16, resident)
                _const_spec((1, A_pad)),                   # actor bias
            ],
            out_specs=pl.BlockSpec((tb, _OUT_W), lambda i: (i, 0)),
        ),
        compiler_params=pltpu.CompilerParams(
            dimension_semantics=("parallel",)),
    )(x, params["wa"], params["ba"])
    return slab[:B]


# ----------------------------------------------------------------------------
# jitted act / evaluate implementations (single dispatch each)
# ----------------------------------------------------------------------------
@jax.jit
def _act_impl(params, logic_state):
    B = logic_state.shape[0]
    x = logic_state.reshape(B, -1)
    slab = _act_forward(params, x)
    action = slab[0, _COL_ARGMAX].astype(jnp.int32)    # first argmax of row 0
    action_logprob = slab[0, _COL_LOGP_MAX]
    return action, action_logprob


@jax.jit
def _evaluate_impl(params, neural_state, logic_state, action):
    B = logic_state.shape[0]
    x = logic_state.reshape(B, -1)
    slab = _evaluate_forward(params, x, action, neural_state)
    action_logprobs = slab[:, _COL_LOGP_ACT]
    state_values = slab[:, _COL_VALUE:_COL_VALUE + 1]
    dist_entropy = slab[:, _COL_ENTROPY]
    return action_logprobs, state_values, dist_entropy


# ----------------------------------------------------------------------------
# Module-level wrapper mirroring SymbolicMicroProgramModel.act / .evaluate
# ----------------------------------------------------------------------------
class SymbolicMicroProgramModelPallas:
    def __init__(self, n_objects, obj_dim, n_actions, d_neural, d_hidden, key):
        self.n_objects = n_objects
        self.obj_dim = obj_dim
        self.n_actions = n_actions
        k = jax.random.split(key, 3)
        F = n_objects * obj_dim

        # actor (synthetic clause weights), padded to 128 action lanes, stored bf16;
        # padded lanes get zero weights and a FINITE -1e30 f32 bias so softmax /
        # entropy / argmax ignore them without producing NaNs.
        w_actor = (jax.random.normal(k[0], (F, n_actions)) * 0.1).astype(jnp.bfloat16)
        wa_pad = jnp.zeros((F, _LANE), jnp.bfloat16).at[:, :n_actions].set(w_actor)
        ba_pad = jnp.full((1, _LANE), -1e30, jnp.float32).at[:, :n_actions].set(0.0)

        # critic (synthetic value head); W1 streamed bf16, w2 kept f32 as a row vector
        # for the in-kernel VPU mul + lane reduce.
        w1 = (jax.random.normal(k[1], (d_neural, d_hidden)) * 0.1).astype(jnp.bfloat16)
        b1 = jnp.zeros((1, d_hidden), jnp.float32)
        w2 = (jax.random.normal(k[2], (d_hidden, 1)) * 0.1).astype(jnp.float32)
        b2 = jnp.zeros((1, 1), jnp.float32)

        self.params = {
            "wa": wa_pad, "ba": ba_pad,
            "w1": w1, "b1": b1, "w2": w2.T, "b2": b2,   # w2 as (1, H)
        }

    def act(self, logic_state, epsilon=0.0):
        # epsilon-uniform exploration branch skipped (epsilon == 0.0 default;
        # self.uniform is undefined in the reference __init__).
        return _act_impl(self.params, logic_state)

    def evaluate(self, neural_state, logic_state, action):
        return _evaluate_impl(self.params, neural_state, logic_state, action)


# ----------------------------------------------------------------------------
if __name__ == "__main__":
    key = jax.random.PRNGKey(0)
    k_param, k_logic, k_neural, k_act = jax.random.split(key, 4)

    B, N_OBJ, OBJ_DIM = 2, 4, 16          # logic_state: (B, objects, features)
    N_ACTIONS = 8
    D_NEURAL, D_HIDDEN = 32, 32           # neural_state: (B, 32)

    model = SymbolicMicroProgramModelPallas(
        N_OBJ, OBJ_DIM, N_ACTIONS, D_NEURAL, D_HIDDEN, k_param)

    logic_state = jax.random.normal(k_logic, (B, N_OBJ, OBJ_DIM), jnp.float32)
    neural_state = jax.random.normal(k_neural, (B, D_NEURAL), jnp.float32)
    actions = jax.random.randint(k_act, (B,), 0, N_ACTIONS)

    # act() uses a single-sample logic state (batch = 1), as in the reference usage.
    action, action_logprob = model.act(logic_state[:1])
    action_logprobs, state_values, dist_entropy = model.evaluate(
        neural_state, logic_state, actions)

    jax.block_until_ready((action, action_logprob, action_logprobs,
                           state_values, dist_entropy))

    # ------------------------------------------------------------------
    # sanity checks against a plain-JAX reference (same bf16 quantization, f32 math)
    # ------------------------------------------------------------------
    xq = logic_state.reshape(B, -1).astype(jnp.bfloat16).astype(jnp.float32)
    nq = neural_state.astype(jnp.bfloat16).astype(jnp.float32)
    wa = model.params["wa"].astype(jnp.float32)[:, :N_ACTIONS]
    ba = model.params["ba"][:, :N_ACTIONS]
    logits = xq @ wa + ba
    ref_probs = jax.nn.softmax(logits, axis=-1)
    ref_logp = jax.nn.log_softmax(logits, axis=-1)
    ref_ent = -jnp.sum(ref_probs * ref_logp, axis=-1)
    w1f = model.params["w1"].astype(jnp.float32)
    ref_h = jnp.tanh(nq @ w1f + model.params["b1"])
    ref_v = ref_h @ model.params["w2"].T + model.params["b2"]

    assert jnp.allclose(
        action_logprobs,
        jnp.take_along_axis(ref_logp, actions[:, None], 1)[:, 0],
        atol=5e-4,
    )
    # entropy goes through the EUP approx reciprocal -> looser tolerance
    assert jnp.allclose(dist_entropy, ref_ent, atol=5e-3)
    assert jnp.allclose(state_values, ref_v, atol=5e-4)
    assert int(action) == int(jnp.argmax(ref_probs[0]))
    assert jnp.allclose(action_logprob, ref_logp[0, int(action)], atol=5e-4)

    print("KERNEL_OK")
</pallas_src>

<mosaic_0001>
module attributes {stable_mosaic.version = 11 : i64} {
  func.func @_act_kernel(%arg0: i32, %arg1: memref<8x64xbf16, #tpu.memory_space<vmem>>, %arg2: memref<64x128xbf16, #tpu.memory_space<vmem>>, %arg3: memref<1x128xf32, #tpu.memory_space<vmem>>, %arg4: memref<8x8xf32, #tpu.memory_space<vmem>>) attributes {dimension_semantics = [#tpu.dimension_semantics<parallel>], iteration_bounds = array<i64: 1>, scalar_prefetch = 0 : i64, scratch_operands = 0 : i64, tpu.core_type = #tpu.core_type<tc>, window_params = [{transform_indices = @transform_0, window_bounds = array<i64: 8, 64>}, {pipeline_mode = #tpu.pipeline_mode<synchronous>, transform_indices = @transform_1, window_bounds = array<i64: 64, 128>}, {pipeline_mode = #tpu.pipeline_mode<synchronous>, transform_indices = @transform_2, window_bounds = array<i64: 1, 128>}, {transform_indices = @transform_3, window_bounds = array<i64: 8, 8>}]} {
    %c0 = arith.constant 0 : index
    %c0_0 = arith.constant 0 : index
    %0 = vector.load %arg1[%c0, %c0_0] : memref<8x64xbf16, #tpu.memory_space<vmem>>, vector<8x64xbf16>
    %c0_1 = arith.constant 0 : index
    %c0_2 = arith.constant 0 : index
    %1 = vector.load %arg2[%c0_1, %c0_2] : memref<64x128xbf16, #tpu.memory_space<vmem>>, vector<64x128xbf16>
    %c0_3 = arith.constant 0 : index
    %c0_4 = arith.constant 0 : index
    %2 = vector.load %arg3[%c0_3, %c0_4] : memref<1x128xf32, #tpu.memory_space<vmem>>, vector<1x128xf32>
    %cst = arith.constant dense<0.000000e+00> : vector<8x128xf32>
    %3 = tpu.matmul %0, %1, %cst {dimension_numbers = #tpu.dot_dimension_numbers<[1], [0], [0], [1], [0, 0, 1, 1], [], []>} : vector<8x64xbf16>, vector<64x128xbf16>, vector<8x128xf32> -> vector<8x128xf32>
    %4 = vector.broadcast %2 : vector<1x128xf32> to vector<8x128xf32>
    %5 = arith.addf %3, %4 : vector<8x128xf32>
    %cst_5 = arith.constant dense<0xFF800000> : vector<8xf32>
    %6 = vector.multi_reduction <maximumf>, %5, %cst_5 [1] : vector<8x128xf32> to vector<8xf32>
    %7 = vector.shape_cast %6 : vector<8xf32> to vector<8x1xf32>
    %8 = vector.broadcast %7 : vector<8x1xf32> to vector<8x128xf32>
    %9 = arith.subf %5, %8 : vector<8x128xf32>
    %10 = math.exp %9 : vector<8x128xf32>
    %cst_6 = arith.constant dense<0.000000e+00> : vector<8xf32>
    %11 = vector.multi_reduction <add>, %10, %cst_6 [1] : vector<8x128xf32> to vector<8xf32>
    %12 = vector.shape_cast %11 : vector<8xf32> to vector<8x1xf32>
    %13 = math.log %12 : vector<8x1xf32>
    %14 = tpu.iota {dimensions = array<i32: 1>} : vector<8x128xi32>
    %15 = vector.broadcast %7 : vector<8x1xf32> to vector<8x128xf32>
    %16 = arith.cmpf oeq, %5, %15 : vector<8x128xf32>
    %c128_i32 = arith.constant 128 : i32
    %17 = vector.broadcast %c128_i32 : i32 to vector<8x128xi32>
    %18 = arith.select %16, %14, %17 : vector<8x128xi1>, vector<8x128xi32>
    %cst_7 = arith.constant dense<2147483647> : vector<8xi32>
    %19 = vector.multi_reduction <minsi>, %18, %cst_7 [1] : vector<8x128xi32> to vector<8xi32>
    %20 = vector.shape_cast %19 : vector<8xi32> to vector<8x1xi32>
    %cst_8 = arith.constant 0.000000e+00 : f32
    %21 = vector.broadcast %cst_8 : f32 to vector<8x1xf32>
    %22 = arith.subf %21, %13 : vector<8x1xf32>
    %23 = tpu.iota {dimensions = array<i32: 1>} : vector<8x8xi32>
    %c0_i32 = arith.constant 0 : i32
    %24 = vector.broadcast %c0_i32 : i32 to vector<8x8xi32>
    %25 = arith.cmpi eq, %23, %24 : vector<8x8xi32>
    %26 = arith.sitofp %20 : vector<8x1xi32> to vector<8x1xf32>
    %cst_9 = arith.constant 0.000000e+00 : f32
    %27 = vector.shape_cast %26 : vector<8x1xf32> to vector<8x1xf32>
    %28 = vector.broadcast %27 : vector<8x1xf32> to vector<8x8xf32>
    %29 = vector.broadcast %cst_9 : f32 to vector<8x8xf32>
    %30 = arith.select %25, %28, %29 : vector<8x8xi1>, vector<8x8xf32>
    %c1_i32 = arith.constant 1 : i32
    %31 = vector.broadcast %c1_i32 : i32 to vector<8x8xi32>
    %32 = arith.cmpi eq, %23, %31 : vector<8x8xi32>
    %33 = vector.shape_cast %22 : vector<8x1xf32> to vector<8x1xf32>
    %34 = vector.broadcast %33 : vector<8x1xf32> to vector<8x8xf32>
    %35 = arith.select %32, %34, %30 : vector<8x8xi1>, vector<8x8xf32>
    %c0_10 = arith.constant 0 : index
    %c0_11 = arith.constant 0 : index
    %36 = vector.load %arg4[%c0_10, %c0_11] : memref<8x8xf32, #tpu.memory_space<vmem>>, vector<8x8xf32>
    tpu.vector_store %arg4[%c0_10, %c0_11], %35 {strides = array<i32>} : memref<8x8xf32, #tpu.memory_space<vmem>>, vector<8x8xf32>,
    return
  }
  func.func @transform_0(%arg0: i32) -> (i32, i32) {
    %c0_i32 = arith.constant 0 : i32
    %c0_i32_0 = arith.constant 0 : i32
    return %arg0, %c0_i32 : i32, i32
  }
  func.func @transform_1(%arg0: i32) -> (i32, i32) {
    %c0_i32 = arith.constant 0 : i32
    %c0_i32_0 = arith.constant 0 : i32
    %c0_i32_1 = arith.constant 0 : i32
    return %c0_i32, %c0_i32_0 : i32, i32
  }
  func.func @transform_2(%arg0: i32) -> (i32, i32) {
    %c0_i32 = arith.constant 0 : i32
    %c0_i32_0 = arith.constant 0 : i32
    %c0_i32_1 = arith.constant 0 : i32
    return %c0_i32, %c0_i32_0 : i32, i32
  }
  func.func @transform_3(%arg0: i32) -> (i32, i32) {
    %c0_i32 = arith.constant 0 : i32
    %c0_i32_0 = arith.constant 0 : i32
    return %arg0, %c0_i32 : i32, i32
  }
}

</mosaic_0001>

<bundles_post_ra>
// kernel: _act_impl.1
= control target key start
LH: loop header
LB: loop body
LE: loop exit
PB: predicated region body
PF: predicated region fallthrough
CT: control target
= control target key end

     0   :  { %8 = vsyncpa [#allocation3], 0  ;;  %s180_s15 = smov [#allocation2]   ;;  %s181_s17 = smov 64   ;;  %s215_s0 = inlined_call_operand.vmem [shape: bf16[8,64], index: 0, kind: input, shape index: {}]   ;;  %s216_s1 = inlined_call_operand.hbm [shape: bf16[64,128], index: 1, kind: input, shape index: {}]   ;;  %s217_s2 = inlined_call_operand.vmem [shape: f32[1,128], index: 2, kind: input, shape index: {}]   ;;  %s218_s3 = inlined_call_operand.vmem [shape: f32[8,8], index: 3, kind: output, shape index: {}]  }
   0x1   :  { %s15_s14 = sshll.u32 %s216_s1, 4  ;;  %s17_s16 = sshll.u32 %s180_s15, 4  ;;  %s16_s14 = int_to_ptr.hbm [resolvable:$true] %s15_s14  ;;  %s18_s16 = int_to_ptr.vmem [resolvable:$true] %s17_s16 }
   0x2   :  { %s182_s18 = smov 4  }
   0x3   :  { %23 = dma.hbm_to_vmem [thread:$0]  %s16_s14, 512, %s18_s16, [#allocation3], %s181_s17, %s181_s17, %s182_s18  }
   0x4   :  { %178 = dma.done.wait [#allocation3], 512  }
   0x5   :  { %179 = vsyncadd [#allocation3], 4294966784  ;;  %v145_v0 = vld [vmem:[#allocation2 + $0x18] sm:$0xff]  ;;  %v144_v1 = vld [vmem:[#allocation2 + $0x10] sm:$0xff]  ;;  %vm68_vm0 = vcmask 523264   ;;  %v94_v9 = vlaneseq  ;;  %vm118_vm5 = vcmask 64512  }
   0x6   :  { %76 = vmatpush.bf16.msra.mxu0 %v145_v0  ;;  %v143_v2 = vld [vmem:[#allocation2 + $0x8] sm:$0xff]  ;;  %v142_v3 = vld [vmem:[#allocation2] sm:$0xff] }
   0x7   :  { %v31_v4 = vld [vmem:[%s215_s0] sm:$0xf]  ;;  %v95_v10 = vand.u32 127, %v94_v9 }
   0x8   :  { %v149_v5 = vld [vmem:[%s217_s2] ss:$0 sm:$0xff] }
   0x9   :  { %vm113_vm3 = vcmp.eq.s32.totalorder %v95_v10, 0  ;;  %vm116_vm4 = vcmp.eq.s32.totalorder %v95_v10, 1 }
   0xa   :  { %77 = vmatpush.bf16.msra.mxu0 %v144_v1 }
   0xe   :  { %78 = vmatpush.bf16.msra.mxu0 %v143_v2 }
  0x12   :  { %79 = vmatpush.bf16.msra.mxu0 %v142_v3 }
  0x15   :  { %141 = vmatmul.msk.bf16.vlgmr.msra.gmra.mxu0 %vm68_vm0, %v31_v4 }
  0x92   :  { %v81_v6 = vpop.f32.mrf.mxu0 }
  0x93   :  { %v82_v7 = vadd.f32 %v149_v5, %v81_v6 }
  0x95   :  { %85 = vmax.xlane.f32.xlu0 %v82_v7 }
  0x9a   :  { %v83_v8 = vpop.f32.mrf.mxu0 }
 0x108   :  { %v86_v11 = vpop.xlane.xlu0 %85 }
 0x109   :  { %v87_v12 = vsub.f32 %v82_v7, %v86_v11  ;;  %vm96_vm1 = vcmp.eq.f32.partialorder %v82_v7, %v86_v11 }
 0x10a   :  { %v97_v13 = vsel %vm96_vm1, %v95_v10, 128 }
 0x10b   :  { %v99_v14 = vshra.s32 %v97_v13, 16  ;;  %v88_v15 = vmul.f32 1.442695, %v87_v12  ;;  %v98_v18 = vand.u32 65535, %v97_v13 }
 0x10d   :  { %v101_v16 = vcvt.s32.f32 %v99_v14  ;;  %150 = vpow2.f32 %v88_v15  ;;  %v100_v20 = vcvt.s32.f32 %v98_v18 }
 0x10f   :  { %102 = vmin.xlane.f32.xlu0 %v101_v16 }
 0x113   :  { %v151_v17 = vpop.eup %150 }
 0x114   :  { %90 = vadd.xlane.f32.xlu1 %v151_v17 }
 0x182   :  { %v103_v19 = vpop.xlane.xlu0 %102 }
 0x183   :  { %vm104_vm2 = vcmp.eq.f32.partialorder %v101_v16, %v103_v19  ;;  %v109_v23 = vcvt.f32.s32 %v103_v19 }
 0x184   :  { %v105_v21 = vsel %vm104_vm2, %v100_v20, inf }
 0x185   :  { %106 = vmin.xlane.f32.xlu1 %v105_v21  ;;  %v110_v26 = vshll.u32 %v109_v23, 16 }
 0x187   :  { %v91_v22 = vpop.xlane.xlu1 %90 }
 0x188   :  { %152 = vlog2.f32 %v91_v22 }
 0x18e   :  { %v153_v24 = vpop.eup %152 }
 0x18f   :  { %v93_v28 = vmul.f32 0.6931472, %v153_v24 }
 0x191   :  { %v112_v31 = vsub.f32 0.0, %v93_v28 }
 0x1f8   :  { %v107_v25 = vpop.xlane.xlu1 %106 }
 0x1f9   :  { %v108_v27 = vcvt.f32.s32 %v107_v25 }
 0x1fb   :  { %v111_v29 = vadd.s32 %v110_v26, %v108_v27 }
 0x1fd   :  { %v114_v30 = vcvt.s32.f32 %v111_v29 }
 0x1ff   :  { %v115_v32 = vsel %vm113_vm3, %v114_v30, 0.0 }
 0x200   :  { %v117_v33 = vsel %vm116_vm4, %v112_v31, %v115_v32 }
 0x201   :  { %119 = vst.msk [vmem:[%s218_s3] sm:$0xff] %vm118_vm5, %v117_v33 }
 0x202   :  { %124 = vsyncpa [#allocation3], 1 }

</bundles_post_ra>
